<compile_context>
chip_gen: v7x
topology: tpu7x:2x2x1
jax: 0.10.0
libtpu: 0.0.40
codegen_flags: <defaults>
</compile_context>

<pallas_src>
import jax
import jax.numpy as jnp
from jax.experimental import pallas as pl
from jax.experimental.pallas import tpu as pltpu


def _round_up(x, m):
    return ((x + m - 1) // m) * m


def _vmem_capacity_bytes():
    """Per-core VMEM capacity; conservative fallback (v7x = 64 MiB) if unknown."""
    try:
        return int(pltpu.get_tpu_info().vmem_capacity_bytes)
    except Exception:
        return 64 * 1024 * 1024


# ----------------------------------------------------------------------------
# Kernels
# ----------------------------------------------------------------------------
def ffn_kernel_inplace(x_ref, w1_ref, b1_ref, w2_ref, b2_ref, o_ref):
    """f32-output variant: accumulate directly into o_ref (no scratch)."""
    # x_ref:  (tm, D)       token tile (compute dtype)
    # w1_ref: (D, tn_h)     hidden-tile slice of first weight (compute dtype)
    # b1_ref: (1, tn_h)     hidden-tile slice of first bias (f32)
    # w2_ref: (tn_h, D)     hidden-tile slice of second weight (compute dtype)
    # b2_ref: (1, D)        second bias (f32)
    # o_ref:  (tm, D) f32   output tile == accumulator (resident across k)
    k = pl.program_id(1)

    h = jnp.dot(x_ref[...], w1_ref[...], preferred_element_type=jnp.float32)
    h = jnp.maximum(h + b1_ref[...], 0.0)                    # bias + ReLU in f32
    contrib = jnp.dot(h.astype(w2_ref.dtype), w2_ref[...],
                      preferred_element_type=jnp.float32)

    @pl.when(k == 0)
    def _():
        o_ref[...] = contrib + b2_ref[...]

    @pl.when(k != 0)
    def _():
        o_ref[...] = o_ref[...] + contrib


def ffn_kernel_acc(x_ref, w1_ref, b1_ref, w2_ref, b2_ref, o_ref, acc_ref):
    """Low-precision-output variant: f32 VMEM scratch accumulator."""
    k = pl.program_id(1)

    @pl.when(k == 0)
    def _():
        acc_ref[...] = jnp.zeros_like(acc_ref)

    h = jnp.dot(x_ref[...], w1_ref[...], preferred_element_type=jnp.float32)
    h = jnp.maximum(h + b1_ref[...], 0.0)
    acc_ref[...] += jnp.dot(h.astype(w2_ref.dtype), w2_ref[...],
                            preferred_element_type=jnp.float32)

    @pl.when(k == pl.num_programs(1) - 1)
    def _():
        o_ref[...] = (acc_ref[...] + b2_ref[...]).astype(o_ref.dtype)


# ----------------------------------------------------------------------------
# Tile selection (generation-aware)
# ----------------------------------------------------------------------------
def _select_tiles(M, D_pad, H_pad, cd_size, out_size, tm_user, tn_user):
    capacity = _vmem_capacity_bytes()
    budget = int(capacity * 0.70)            # headroom for Mosaic internal scratch
    # packed-sublane granularity: 8 rows for f32, 16 for bf16, 32 for int8/fp8
    gran = 32 // min(cd_size, out_size)
    M_g = _round_up(max(M, 1), gran)

    def footprint(tm_, tn_):
        b = 0
        b += 2 * tm_ * D_pad * cd_size                  # x tile (double-buffered)
        b += 2 * tm_ * D_pad * out_size                 # out tile
        b += tm_ * D_pad * 4                            # f32 accumulator (worst case)
        b += 2 * (D_pad * tn_ + tn_ * D_pad) * cd_size  # w1 + w2 tiles
        b += 2 * (8 * tn_ + 8 * D_pad) * 4              # biases (sublane padded)
        return b

    # ---- token tile --------------------------------------------------------
    if tm_user is not None:
        tm_ = _round_up(min(tm_user, M_g), gran)
    else:
        tm_pref = 512 if capacity >= 96 * 1024 * 1024 else 256
        tm_ = min(tm_pref, M_g)
        if tm_ >= M_g and M_g >= 2 * gran:
            # give both v7x TensorCores a token tile (harmless elsewhere)
            tm_ = _round_up((M_g + 1) // 2, gran)

    # ---- hidden tile: prefer full weight residency in VMEM -----------------
    if tn_user is not None:
        tn_ = min(_round_up(tn_user, 128), H_pad)
        resident = tn_ >= H_pad
    elif footprint(tm_, H_pad) <= budget:
        tn_, resident = H_pad, True
    else:
        resident = False
        tn_ = None
        for cand in (1024, 512, 256, 128):
            c = min(cand, H_pad)
            if footprint(tm_, c) <= budget:
                tn_ = c
                break
        if tn_ is None:                       # last resort for huge d_model
            tm_, tn_ = gran, 128

    vmem_limit = min(capacity,
                     max(int(footprint(tm_, tn_) * 1.5), 32 * 1024 * 1024))
    return tm_, tn_, resident, int(vmem_limit)


# ----------------------------------------------------------------------------
# Wrapper
# ----------------------------------------------------------------------------
def position_wise_nn(x, w1, b1, w2, b2, *, compute_dtype=jnp.bfloat16,
                     tm=None, tn_h=None):
    """x: (batch, seq, d_model) -> (batch, seq, d_model)."""
    batch, seq, d_model = x.shape
    n_hidden = w1.shape[1]
    M = batch * seq
    out_dtype = x.dtype
    cd_size = jnp.dtype(compute_dtype).itemsize
    out_size = jnp.dtype(out_dtype).itemsize

    # --- padding / tile selection -------------------------------------------
    D_pad = _round_up(d_model, 128)                 # lane-dense feature axis
    H_pad0 = _round_up(n_hidden, 128)
    tm_, tn_h_, resident, vmem_limit = _select_tiles(
        M, D_pad, H_pad0, cd_size, out_size, tm, tn_h)
    H_pad = _round_up(H_pad0, tn_h_)
    M_pad = _round_up(M, tm_)

    x2d = jnp.pad(x.reshape(M, d_model).astype(compute_dtype),
                  ((0, M_pad - M), (0, D_pad - d_model)))
    w1p = jnp.pad(w1.astype(compute_dtype),
                  ((0, D_pad - d_model), (0, H_pad - n_hidden)))
    b1p = jnp.pad(b1.astype(jnp.float32).reshape(1, n_hidden),
                  ((0, 0), (0, H_pad - n_hidden)))
    w2p = jnp.pad(w2.astype(compute_dtype),
                  ((0, H_pad - n_hidden), (0, D_pad - d_model)))
    b2p = jnp.pad(b2.astype(jnp.float32).reshape(1, d_model),
                  ((0, 0), (0, D_pad - d_model)))

    grid = (M_pad // tm_, H_pad // tn_h_)           # reduction (hidden) axis last

    # --- cost estimate (counts weight re-streaming when not resident) -------
    grid_m = grid[0]
    weight_passes = 1 if resident else grid_m
    flops = 4 * M * d_model * n_hidden              # two matmuls, 2 flops / MAC
    bytes_accessed = int(
        x2d.size * cd_size
        + weight_passes * (w1p.size + w2p.size) * cd_size
        + weight_passes * b1p.size * 4 + b2p.size * 4
        + M_pad * D_pad * out_size)
    cost = pl.CostEstimate(flops=flops, transcendentals=0,
                           bytes_accessed=bytes_accessed)

    # --- kernel variant: f32 outputs accumulate in-place (saves VMEM) -------
    use_inplace = out_dtype == jnp.float32
    kernel = ffn_kernel_inplace if use_inplace else ffn_kernel_acc
    scratch = [] if use_inplace else [pltpu.VMEM((tm_, D_pad), jnp.float32)]

    out2d = pl.pallas_call(
        kernel,
        out_shape=jax.ShapeDtypeStruct((M_pad, D_pad), out_dtype),
        grid_spec=pltpu.PrefetchScalarGridSpec(
            num_scalar_prefetch=0,
            grid=grid,
            in_specs=[
                pl.BlockSpec((tm_, D_pad), lambda i, k: (i, 0)),     # x tile
                pl.BlockSpec((D_pad, tn_h_), lambda i, k: (0, k)),   # w1 hidden tile
                pl.BlockSpec((1, tn_h_), lambda i, k: (0, k)),       # b1 hidden tile
                pl.BlockSpec((tn_h_, D_pad), lambda i, k: (k, 0)),   # w2 hidden tile
                pl.BlockSpec((1, D_pad), lambda i, k: (0, 0)),       # b2
            ],
            out_specs=pl.BlockSpec((tm_, D_pad), lambda i, k: (i, 0)),
            scratch_shapes=scratch,
        ),
        compiler_params=pltpu.CompilerParams(
            dimension_semantics=("parallel", "arbitrary"),
            vmem_limit_bytes=vmem_limit,
        ),
        cost_estimate=cost,
    )(x2d, w1p, b1p, w2p, b2p)

    return out2d[:M, :d_model].reshape(batch, seq, d_model)


# ----------------------------------------------------------------------------
# Reference + init helpers
# ----------------------------------------------------------------------------
def ffn_reference(x, w1, b1, w2, b2, compute_dtype):
    """Mixed-precision reference matching the kernel's rounding behaviour."""
    cd = compute_dtype
    m = x.shape[0] * x.shape[1]
    x2 = x.reshape(m, -1)
    h = jnp.dot(x2.astype(cd), w1.astype(cd), preferred_element_type=jnp.float32)
    h = jnp.maximum(h + b1.astype(jnp.float32), 0.0)
    y = jnp.dot(h.astype(cd), w2.astype(cd), preferred_element_type=jnp.float32)
    y = y + b2.astype(jnp.float32)
    return y.astype(x.dtype).reshape(x.shape[0], x.shape[1], w2.shape[1])


def init_params(key, d_model, dtype=jnp.float32):
    """Deterministic init matching nn.Linear shapes (stored transposed)."""
    n_hidden = 4 * d_model
    k1, k2, k3, k4 = jax.random.split(key, 4)
    lim1 = 1.0 / (d_model ** 0.5)
    lim2 = 1.0 / (n_hidden ** 0.5)
    w1 = jax.random.uniform(k1, (d_model, n_hidden), jnp.float32, -lim1, lim1)
    b1 = jax.random.uniform(k2, (n_hidden,), jnp.float32, -lim1, lim1)
    w2 = jax.random.uniform(k3, (n_hidden, d_model), jnp.float32, -lim2, lim2)
    b2 = jax.random.uniform(k4, (d_model,), jnp.float32, -lim2, lim2)
    return (w1.astype(dtype), b1.astype(dtype), w2.astype(dtype), b2.astype(dtype))


if __name__ == "__main__":
    key = jax.random.PRNGKey(0)

    # --- test 1: exact f32 path (compute_dtype=f32), auto tiles -------------
    batch, seq, d_model = 2, 8, 32                 # n_hidden = 128
    kx, kp, key = jax.random.split(key, 3)
    x = jax.random.normal(kx, (batch, seq, d_model), jnp.float32)
    w1, b1, w2, b2 = init_params(kp, d_model)

    y = position_wise_nn(x, w1, b1, w2, b2, compute_dtype=jnp.float32)
    y = jax.block_until_ready(y)
    ref = jnp.maximum(x @ w1 + b1, 0.0) @ w2 + b2
    assert y.shape == (batch, seq, d_model)
    assert jnp.allclose(y, ref, atol=1e-5, rtol=1e-5)

    # --- test 2: default bf16 MXU path, forced multi-tile grid (ragged M) ---
    batch2, seq2, d_model2 = 2, 12, 64             # n_hidden = 256, M = 24
    kx2, kp2, key = jax.random.split(key, 3)
    x2 = jax.random.normal(kx2, (batch2, seq2, d_model2), jnp.float32)
    w1b, b1b, w2b, b2b = init_params(kp2, d_model2)

    y2 = position_wise_nn(x2, w1b, b1b, w2b, b2b, tm=16, tn_h=128)  # bf16 compute
    y2 = jax.block_until_ready(y2)
    ref2_mixed = ffn_reference(x2, w1b, b1b, w2b, b2b, jnp.bfloat16)
    ref2_f32 = jnp.maximum(x2 @ w1b + b1b, 0.0) @ w2b + b2b
    assert y2.shape == (batch2, seq2, d_model2)
    assert jnp.allclose(y2, ref2_mixed, atol=1e-3, rtol=1e-3)
    assert jnp.allclose(y2, ref2_f32, atol=1e-1)   # sanity: mixed precision close

    # --- test 3: bf16 inputs/outputs (scratch-accumulator kernel variant) ---
    kx3, kp3 = jax.random.split(key)
    x3 = jax.random.normal(kx3, (batch, seq, d_model), jnp.float32).astype(jnp.bfloat16)
    w1c, b1c, w2c, b2c = init_params(kp3, d_model, dtype=jnp.bfloat16)

    y3 = position_wise_nn(x3, w1c, b1c, w2c, b2c)
    y3 = jax.block_until_ready(y3)
    ref3 = ffn_reference(x3, w1c, b1c, w2c, b2c, jnp.bfloat16)
    assert y3.dtype == jnp.bfloat16
    assert jnp.allclose(y3.astype(jnp.float32), ref3.astype(jnp.float32),
                        atol=2e-2, rtol=2e-2)

    print("KERNEL_OK")
</pallas_src>

<mosaic_0001>
module attributes {stable_mosaic.version = 11 : i64} {
  func.func @ffn_kernel_inplace(%arg0: i32, %arg1: i32, %arg2: memref<8x128xf32, #tpu.memory_space<vmem>>, %arg3: memref<128x128xf32, #tpu.memory_space<vmem>>, %arg4: memref<1x128xf32, #tpu.memory_space<vmem>>, %arg5: memref<128x128xf32, #tpu.memory_space<vmem>>, %arg6: memref<1x128xf32, #tpu.memory_space<vmem>>, %arg7: memref<8x128xf32, #tpu.memory_space<vmem>>) attributes {dimension_semantics = [#tpu.dimension_semantics<parallel>, #tpu.dimension_semantics<arbitrary>], iteration_bounds = array<i64: 2, 1>, scalar_prefetch = 0 : i64, scratch_operands = 0 : i64, tpu.core_type = #tpu.core_type<tc>, window_params = [{transform_indices = @transform_0, window_bounds = array<i64: 8, 128>}, {transform_indices = @transform_1, window_bounds = array<i64: 128, 128>}, {transform_indices = @transform_2, window_bounds = array<i64: 1, 128>}, {transform_indices = @transform_3, window_bounds = array<i64: 128, 128>}, {pipeline_mode = #tpu.pipeline_mode<synchronous>, transform_indices = @transform_4, window_bounds = array<i64: 1, 128>}, {transform_indices = @transform_5, window_bounds = array<i64: 8, 128>}]} {
    %c0 = arith.constant 0 : index
    %c0_0 = arith.constant 0 : index
    %0 = vector.load %arg2[%c0, %c0_0] : memref<8x128xf32, #tpu.memory_space<vmem>>, vector<8x128xf32>
    %c0_1 = arith.constant 0 : index
    %c0_2 = arith.constant 0 : index
    %1 = vector.load %arg3[%c0_1, %c0_2] : memref<128x128xf32, #tpu.memory_space<vmem>>, vector<128x128xf32>
    %cst = arith.constant dense<0.000000e+00> : vector<8x128xf32>
    %2 = tpu.matmul %0, %1, %cst {dimension_numbers = #tpu.dot_dimension_numbers<[1], [0], [0], [1], [0, 0, 1, 1], [], []>} : vector<8x128xf32>, vector<128x128xf32>, vector<8x128xf32> -> vector<8x128xf32>
    %c0_3 = arith.constant 0 : index
    %c0_4 = arith.constant 0 : index
    %3 = vector.load %arg4[%c0_3, %c0_4] : memref<1x128xf32, #tpu.memory_space<vmem>>, vector<1x128xf32>
    %4 = vector.broadcast %3 : vector<1x128xf32> to vector<8x128xf32>
    %5 = arith.addf %2, %4 : vector<8x128xf32>
    %cst_5 = arith.constant 0.000000e+00 : f32
    %6 = vector.broadcast %cst_5 : f32 to vector<8x128xf32>
    %7 = arith.maximumf %5, %6 : vector<8x128xf32>
    %c0_6 = arith.constant 0 : index
    %c0_7 = arith.constant 0 : index
    %8 = vector.load %arg5[%c0_6, %c0_7] : memref<128x128xf32, #tpu.memory_space<vmem>>, vector<128x128xf32>
    %cst_8 = arith.constant dense<0.000000e+00> : vector<8x128xf32>
    %9 = tpu.matmul %7, %8, %cst_8 {dimension_numbers = #tpu.dot_dimension_numbers<[1], [0], [0], [1], [0, 0, 1, 1], [], []>} : vector<8x128xf32>, vector<128x128xf32>, vector<8x128xf32> -> vector<8x128xf32>
    %c0_i32 = arith.constant 0 : i32
    %10 = arith.cmpi eq, %arg1, %c0_i32 : i32
    %11 = arith.extui %10 : i1 to i32
    %c0_i32_9 = arith.constant 0 : i32
    %12 = arith.cmpi ne, %11, %c0_i32_9 : i32
    scf.if %12 {
      %c0_12 = arith.constant 0 : index
      %c0_13 = arith.constant 0 : index
      %16 = vector.load %arg6[%c0_12, %c0_13] : memref<1x128xf32, #tpu.memory_space<vmem>>, vector<1x128xf32>
      %17 = vector.broadcast %16 : vector<1x128xf32> to vector<8x128xf32>
      %18 = arith.addf %9, %17 : vector<8x128xf32>
      %c0_14 = arith.constant 0 : index
      %c0_15 = arith.constant 0 : index
      %19 = vector.load %arg7[%c0_14, %c0_15] : memref<8x128xf32, #tpu.memory_space<vmem>>, vector<8x128xf32>
      tpu.vector_store %arg7[%c0_14, %c0_15], %18 {strides = array<i32>} : memref<8x128xf32, #tpu.memory_space<vmem>>, vector<8x128xf32>,
    } else {
    }
    %c0_i32_10 = arith.constant 0 : i32
    %13 = arith.cmpi ne, %arg1, %c0_i32_10 : i32
    %14 = arith.extui %13 : i1 to i32
    %c0_i32_11 = arith.constant 0 : i32
    %15 = arith.cmpi ne, %14, %c0_i32_11 : i32
    scf.if %15 {
      %c0_12 = arith.constant 0 : index
      %c0_13 = arith.constant 0 : index
      %16 = vector.load %arg7[%c0_12, %c0_13] : memref<8x128xf32, #tpu.memory_space<vmem>>, vector<8x128xf32>
      %17 = arith.addf %16, %9 : vector<8x128xf32>
      %c0_14 = arith.constant 0 : index
      %c0_15 = arith.constant 0 : index
      %18 = vector.load %arg7[%c0_14, %c0_15] : memref<8x128xf32, #tpu.memory_space<vmem>>, vector<8x128xf32>
      tpu.vector_store %arg7[%c0_14, %c0_15], %17 {strides = array<i32>} : memref<8x128xf32, #tpu.memory_space<vmem>>, vector<8x128xf32>,
    } else {
    }
    return
  }
  func.func @transform_0(%arg0: i32, %arg1: i32) -> (i32, i32) {
    %c0_i32 = arith.constant 0 : i32
    %c0_i32_0 = arith.constant 0 : i32
    return %arg0, %c0_i32 : i32, i32
  }
  func.func @transform_1(%arg0: i32, %arg1: i32) -> (i32, i32) {
    %c0_i32 = arith.constant 0 : i32
    %c0_i32_0 = arith.constant 0 : i32
    return %c0_i32, %arg1 : i32, i32
  }
  func.func @transform_2(%arg0: i32, %arg1: i32) -> (i32, i32) {
    %c0_i32 = arith.constant 0 : i32
    %c0_i32_0 = arith.constant 0 : i32
    return %c0_i32, %arg1 : i32, i32
  }
  func.func @transform_3(%arg0: i32, %arg1: i32) -> (i32, i32) {
    %c0_i32 = arith.constant 0 : i32
    %c0_i32_0 = arith.constant 0 : i32
    return %arg1, %c0_i32 : i32, i32
  }
  func.func @transform_4(%arg0: i32, %arg1: i32) -> (i32, i32) {
    %c0_i32 = arith.constant 0 : i32
    %c0_i32_0 = arith.constant 0 : i32
    %c0_i32_1 = arith.constant 0 : i32
    return %c0_i32, %c0_i32_0 : i32, i32
  }
  func.func @transform_5(%arg0: i32, %arg1: i32) -> (i32, i32) {
    %c0_i32 = arith.constant 0 : i32
    %c0_i32_0 = arith.constant 0 : i32
    return %arg0, %c0_i32 : i32, i32
  }
}

</mosaic_0001>

<bundles_post_ra>
// kernel: tpu_custom_call.1
= control target key start
LH: loop header
LB: loop body
LE: loop exit
PB: predicated region body
PF: predicated region fallthrough
CT: control target
= control target key end

     0   :  { %10 = vsyncpa [#allocation3], 0  ;;  %s1391_s0 = inlined_call_operand.hbm [shape: f32[16,128], index: 0, kind: input, shape index: {}]   ;;  %s1392_s1 = inlined_call_operand.hbm [shape: f32[128,128], index: 1, kind: input, shape index: {}]   ;;  %s1393_s2 = inlined_call_operand.vmem [shape: f32[1,128], index: 2, kind: input, shape index: {}]   ;;  %s1394_s3 = inlined_call_operand.hbm [shape: f32[128,128], index: 3, kind: input, shape index: {}]   ;;  %s1395_s4 = inlined_call_operand.vmem [shape: f32[1,128], index: 4, kind: input, shape index: {}]   ;;  %s1396_s5 = inlined_call_operand.hbm [shape: f32[16,128], index: 5, kind: output, shape index: {}]  }
   0x1   :  { %12 = vsyncpa [#allocation3 + $0x1], 0 }
   0x2   :  { %13 = vsyncpa [#allocation6], 0 }
   0x3   :  { %14 = vsyncpa [#allocation4], 0 }
   0x4   :  { %16 = vsyncpa [#allocation4 + $0x1], 0  ;;  %s1112_s18 = smov 0   ;;  %s1114_s19 = smov 0  }
   0x5   :  { %s1116_s20 = smov 0   ;;  %s1118_s21 = smov 0  }
   0x6   :  { %s1120_s22 = smov 0   ;;  %s1122_s23 = smov 0  }
   0x7 LB: > { %s639_s24 = sadd.s32 4294967295, %s1071_s23   ;;  %s640_s25 = sadd.s32 4294967294, %s1071_s23   ;;  %s1071_s23 = sphi %s1122_s23, %s22_s23   ;;  %s1067_s22 = sphi %s1120_s22, %s1418_s22   ;;  %s1063_s21 = sphi %s1118_s21, %s1417_s21   ;;  %s1059_s20 = sphi %s1116_s20, %s1416_s20   ;;  %s1055_s19 = sphi %s1114_s19, %s1415_s19   ;;  %s1051_s18 = sphi %s1112_s18, %s1414_s18  }
   0x8   : > { %p54_p0 = scmp.ne.s32.totalorder %s1055_s19, %s1051_s18  ;;  %p1146_p1 = scmp.eq.s32.totalorder %s639_s24, 0 }
   0x9   : > { %p1150_p2 = scmp.eq.s32.totalorder %s639_s24, 1  ;;  %p183_p3 = scmp.eq.s32.totalorder %s640_s25, 1 }
   0xa   : > { %s1401_s26 = scalar_select %p1146_p1, 1, 0 }
   0xb   : > { %p1156_p4 = por %p1146_p1, %p54_p0  ;;  %p641_p5 = scmp.ge.s32.totalorder %s1071_s23, 1 }
   0xc   : > { %p1161_p6 = por %p183_p3, %p54_p0  ;;  %p190_p7 = scmp.lt.s32.totalorder %s1071_s23, 3 }
   0xd   : > { %s1403_s28 = scalar_select %p1156_p4, 1, 0 }
   0xe   : > { %s1404_s29 = scalar_select %p1161_p6, 1, 0 }
   0xf   : > { %p1166_p8 = pnand %p641_p5, %p190_p7  ;;  %s1073_s6 = smov [#allocation5]  }
  0x10   : > { %s204_s7 = sshll.u32 %s1073_s6, 4  ;;  %s1074_s9 = smov [#allocation7]   ;;  %s1170_s7 = int_to_ptr.vmem [resolvable:$true] %s204_s7 }
  0x11   : > { %p823_p9 = pneg %p1166_p8  ;;  %s226_s10 = sshll.u32 %s1074_s9, 4  ;;  %s1181_s10 = int_to_ptr.vmem [resolvable:$true] %s226_s10 }
  0x12   : > { %s899_s13 = scalar_lea.hbm %s1392_s1, 2048 }
  0x13   : > { %p1177_p11 = pnand %p823_p9, %p1146_p1  ;;  %p900_p12 = scmp.ne.s32.totalorder %s1392_s1, %s899_s13 }
  0x14   : > { %p906_p5 = scmp.lt.u32.totalorder %s899_s13, %s1392_s1 }
  0x15   : > { %p901_p13 = pneg %p1177_p11 }
  0x17   : > { %p902_p0 = pnand %p901_p13, %p900_p12 }
  0x19   : > { %p903_p3 = pneg %p902_p0 }
  0x1b   : > { %p908_p7 = pnand %p906_p5, %p903_p3 }
  0x1d   : > { %911 = shalt.err (!%p908_p7)
}
  0x1e   : > { %s912_s24 = scalar_lea.vmem %s1170_s7, 2048  ;;  %p920_p1 = scmp.lt.s32.totalorder %s1170_s7, %s1170_s7 }
  0x1f   : > { %p913_p9 = scmp.ne.s32.totalorder %s1170_s7, %s912_s24  ;;  %p921_p12 = scmp.lt.s32.totalorder %s912_s24, %s912_s24 }
  0x21   : > { %p915_p10 = pnand %p913_p9, %p901_p13  ;;  %p922_p0 = por %p921_p12, %p920_p1 }
  0x23   : > { %p916_p6 = pneg %p915_p10 }
  0x25   : > { %p923_p4 = pnand %p922_p0, %p916_p6 }
  0x27   : > { %926 = shalt.err (!%p923_p4)
}
  0x28   : > { %s1075_s25 = smov 128   ;;  %s1076_s6 = smov 8  }
  0x29   : > { %826 = dma.hbm_to_vmem [thread:$0]  (!%p1177_p11), %s1392_s1, 2048, %s1170_s7, [#allocation6], %s1075_s25, %s1075_s25, %s1076_s6  }
  0x2a   : > { %s927_s14 = scalar_lea.hbm %s1394_s3, 2048 }
  0x2b   : > { %p928_p1 = scmp.ne.s32.totalorder %s1394_s3, %s927_s14  ;;  %p934_p10 = scmp.lt.u32.totalorder %s927_s14, %s1394_s3 }
  0x2d   : > { %p930_p4 = pnand %p928_p1, %p901_p13 }
  0x2f   : > { %p931_p6 = pneg %p930_p4 }
  0x31   : > { %p936_p3 = pnand %p934_p10, %p931_p6 }
  0x33   : > { %939 = shalt.err (!%p936_p3)
}
  0x34   : > { %s940_s7 = scalar_lea.vmem %s1181_s10, 2048  ;;  %p948_p12 = scmp.lt.s32.totalorder %s1181_s10, %s1181_s10 }
  0x35   : > { %p941_p5 = scmp.ne.s32.totalorder %s1181_s10, %s940_s7  ;;  %p949_p0 = scmp.lt.s32.totalorder %s940_s7, %s940_s7 }
  0x37   : > { %p943_p7 = pnand %p941_p5, %p901_p13  ;;  %p950_p1 = por %p949_p0, %p948_p12 }
  0x39   : > { %p944_p9 = pneg %p943_p7 }
  0x3b   : > { %p951_p4 = pnand %p950_p1, %p944_p9 }
  0x3d   : > { %954 = shalt.err (!%p951_p4)
}
  0x3e   : > { %829 = dma.hbm_to_vmem [thread:$0]  (!%p1177_p11), %s1394_s3, 2048, %s1181_s10, [#allocation6], %s1075_s25, %s1075_s25, %s1076_s6  }
  0x3f   : > { %s34_s12 = sadd.s32 1, %s1067_s22  ;;  %s41_s13 = sadd.s32 1, %s1059_s20 }
  0x40   : > { %p36_p13 = scmp.ge.s32.totalorder %s34_s12, 2  ;;  %p48_p6 = scmp.ne.s32.totalorder %s1059_s20, %s1055_s19 }
  0x41   : > { %p49_p10 = scmp.eq.s32.totalorder %s1071_s23, 0  ;;  %p840_p3 = scmp.lt.s32.totalorder %s1071_s23, 2 }
  0x42   : > { %s1420_s12 = smov (%p36_p13, %s34_s12), 0  ;;  %p1245_p7 = por %p1150_p2, %p48_p6 }
  0x43   : > { %p50_p5 = por %p49_p10, %p48_p6  ;;  %s38_s14 = ssub.s32 %s1067_s22, %s1420_s12 }
  0x44   : > { %s1407_s8 = scalar_select %p1245_p7, 1, 0 }
  0x45   : > { %s243_s15 = sand.u32 1, %s1059_s20   ;;  %p39_p9 = scmp.eq.s32.totalorder %s38_s14, 0 }
  0x46   : > { %s646_s10 = sshll.u32 %s243_s15, 3  ;;  %s647_s25 = sshll.u32 %s1067_s22, 7 }
  0x47   : > { %s1254_s6 = scalar_select %p39_p9, %s1059_s20, %s41_s13  }
  0x48   : > { %s1259_s24 = scalar_lea.hbm %s1391_s0, %s647_s25  ;;  %s247_s27 = scalar_lea.vmem [#allocation2], %s646_s10 }
  0x49   : > { %s254_s7 = sshll.u32 %s247_s27, 4  ;;  %p1263_p2 = pnand %p840_p3, %p50_p5  ;;  %s1267_s7 = int_to_ptr.vmem [resolvable:$true] %s254_s7 }
  0x4a   : > { %s244_s11 = scalar_lea.sflag [#allocation3], %s243_s15  ;;  %s955_s13 = scalar_lea.hbm %s1259_s24, 128 }
  0x4b   : > { %p956_p11 = scmp.ne.s32.totalorder %s1259_s24, %s955_s13  ;;  %p957_p12 = pneg %p1263_p2 }
  0x4c   : > { %s960_s25 = scalar_lea.hbm %s1391_s0, 256  ;;  %p961_p4 = scmp.lt.u32.totalorder %s1259_s24, %s1391_s0 }
  0x4d   : > { %p958_p0 = pnand %p957_p12, %p956_p11  ;;  %p962_p13 = scmp.lt.u32.totalorder %s960_s25, %s955_s13 }
  0x4e   : > { %p964_p10 = scmp.lt.u32.totalorder %s955_s13, %s1259_s24 }
  0x4f   : > { %p959_p1 = pneg %p958_p0  ;;  %p963_p6 = por %p962_p13, %p961_p4 }
  0x51   : > { %p965_p3 = por %p964_p10, %p963_p6 }
  0x53   : > { %p966_p5 = pnand %p965_p3, %p959_p1 }
  0x55   : > { %969 = shalt.err (!%p966_p5)
}
  0x56   : > { %s970_s15 = scalar_lea.vmem %s1267_s7, 128  ;;  %s1077_s27 = smov [#allocation2]  }
  0x57   : > { %p971_p9 = scmp.ne.s32.totalorder %s1267_s7, %s970_s15  ;;  %s975_s14 = sshll.u32 %s1077_s27, 4  ;;  %s976_s14 = int_to_ptr.vmem [resolvable:$false] %s975_s14 }
  0x58   : > { %s977_s10 = scalar_lea.vmem %s976_s14, 256  ;;  %p978_p7 = scmp.lt.s32.totalorder %s1267_s7, %s976_s14 }
  0x59   : > { %p973_p11 = pnand %p971_p9, %p957_p12  ;;  %p979_p4 = scmp.lt.s32.totalorder %s977_s10, %s970_s15 }
  0x5b   : > { %p974_p0 = pneg %p973_p11  ;;  %p980_p13 = por %p979_p4, %p978_p7 }
  0x5d   : > { %p981_p6 = pnand %p980_p13, %p974_p0 }
  0x5f   : > { %984 = shalt.err (!%p981_p6)
}
  0x60   : > { %833 = dma.hbm_to_vmem [thread:$0]  (!%p1263_p2), %s1259_s24, 128, %s1267_s7, %s244_s11  }
  0x61   : > { %263 = sbr.rel (%p1166_p8) target bundleno = 587 (0x24b), region = 40  ;;  %s1297_s13 = sand.u32 (!%p1166_p8), 1, %s1055_s19  }
  0x62   : > { %s649_s25 = sshll.u32 (!%p1166_p8), %s1297_s13, 3  ;;  %s266_s16 = scalar_lea.sflag (!%p1166_p8), [#allocation3], %s1297_s13 }
  0x63   : > { %s1303_s17 = scalar_lea.vmem (!%p1166_p8), [#allocation2], %s649_s25  ;;  %p1409_p7 = scmp.ne.s32.totalorder (!%p1166_p8), %s1403_s28, 0 }
  0x68   : > { %1038 = dma.done.wait (%p1409_p7), %s266_s16, 128  }
  0x69   : > { %1040 = vsyncadd (%p1409_p7), %s266_s16, 4294967168  ;;  %p1410_p2 = scmp.ne.s32.totalorder %s1401_s26, 0 }
  0x6b   : > { %1042 = dma.done.wait (%p1410_p2), [#allocation6], 4096  }
  0x6c   : > { %1044 = vsyncadd (%p1410_p2), [#allocation6], 4294963200  ;;  %v1078_v0 = vmov 0.0|0.0   ;;  %vm1079_vm0 = vmmov 0   ;;  %v1080_v1 = vmov 0.0   ;;  %v312_v2 = vld [vmem:[#allocation5] sm:$0xff] }
  0x6d   : > { %763 = vmatprep.subr.bf16.mxu0 %v1078_v0  ;;  %725 = vmatprep.mubr.msk.f32.mxu0 %vm1079_vm0, %v1080_v1  ;;  %v313_v3 = vld [vmem:[#allocation5 + $0x8] sm:$0xff]  ;;  %v314_v4 = vld [vmem:[#allocation5 + $0x10] sm:$0xff]  ;;  %v315_v6 = vld [vmem:[#allocation5 + $0x18] sm:$0xff]  ;;  %s656_s7 = sshll.u32 %s1063_s21, 7  ;;  %s306_s9 = scalar_lea.vmem [#allocation8], %s649_s25 }
  0x6e   : > { %787 = vmatprep.subr.bf16.mxu1 %v1078_v0  ;;  %760 = vmatprep.mubr.msk.f32.mxu1 %vm1079_vm0, %v1080_v1  ;;  %v764_v5 = vpack.c.bf16 %v313_v3, %v312_v2  ;;  %v767_v7 = vpack.c.bf16 %v315_v6, %v314_v4  ;;  %v316_v8 = vld [vmem:[#allocation5 + $0x20] sm:$0xff]  ;;  %v317_v9 = vld [vmem:[#allocation5 + $0x28] sm:$0xff]  ;;  %v408_v12 = vld [vmem:[#allocation7 + $0x10] sm:$0xff]  ;;  %s526_s11 = sshll.u32 %s306_s9, 4  ;;  %s1342_s14 = scalar_lea.hbm %s1396_s5, %s656_s7  ;;  %s1344_s11 = int_to_ptr.vmem [resolvable:$true] %s526_s11 }
  0x6f   : > { %v406_v10 = vld [vmem:[#allocation7] sm:$0xff]  ;;  %v407_v11 = vld [vmem:[#allocation7 + $0x8] sm:$0xff]  ;;  %v409_v13 = vld [vmem:[#allocation7 + $0x18] sm:$0xff]  ;;  %v770_v14 = vpack.c.bf16 %v317_v9, %v316_v8  ;;  %s513_s10 = scalar_lea.sflag [#allocation4], %s1297_s13  ;;  %s985_s16 = scalar_lea.vmem %s1344_s11, 128 }
  0x70   : > { %765 = vmatpush3.bf16.msra.mxu0 %v764_v5  ;;  %v788_v15 = vpack.c.bf16 %v407_v11, %v406_v10  ;;  %v318_v16 = vld [vmem:[#allocation5 + $0x30] sm:$0xff]  ;;  %v319_v17 = vld [vmem:[#allocation5 + $0x38] sm:$0xff]  ;;  %v791_v18 = vpack.c.bf16 %v409_v13, %v408_v12  ;;  %v410_v19 = vld [vmem:[#allocation7 + $0x20] sm:$0xff]  ;;  %p986_p8 = scmp.ne.s32.totalorder %s1344_s11, %s985_s16  ;;  %p1411_p12 = scmp.ne.s32.totalorder %s1407_s8, 0 }
  0x71   : > { %766 = vmatprep.subr.bf16.mxu0 %v1078_v0  ;;  %v411_v20 = vld [vmem:[#allocation7 + $0x28] sm:$0xff]  ;;  %v773_v21 = vpack.c.bf16 %v319_v17, %v318_v16  ;;  %v320_v22 = vld [vmem:[#allocation5 + $0x40] sm:$0xff]  ;;  %v412_v25 = vld [vmem:[#allocation7 + $0x30] sm:$0xff]  ;;  %s1081_s21 = smov [#allocation8]  }
  0x72   : > { %789 = vmatpush3.bf16.msra.mxu1 %v788_v15  ;;  %v321_v23 = vld [vmem:[#allocation5 + $0x48] sm:$0xff]  ;;  %v794_v24 = vpack.c.bf16 %v411_v20, %v410_v19  ;;  %v413_v26 = vld [vmem:[#allocation7 + $0x38] sm:$0xff]  ;;  %v322_v28 = vld [vmem:[#allocation5 + $0x50] sm:$0xff]  ;;  %p987_p1 = pnand %p986_p8, %p1411_p12  ;;  %s989_s25 = sshll.u32 %s1081_s21, 4  ;;  %s990_s25 = int_to_ptr.vmem [resolvable:$false] %s989_s25 }
  0x73   : > { %790 = vmatprep.subr.bf16.mxu1 %v1078_v0  ;;  %v776_v27 = vpack.c.bf16 %v321_v23, %v320_v22  ;;  %v323_v29 = vld [vmem:[#allocation5 + $0x58] sm:$0xff]  ;;  %v797_v30 = vpack.c.bf16 %v413_v26, %v412_v25  ;;  %v414_v31 = vld [vmem:[#allocation7 + $0x40] sm:$0xff]  ;;  %v415_v32 = vld [vmem:[#allocation7 + $0x48] sm:$0xff]  ;;  %p992_p3 = scmp.lt.s32.totalorder %s1344_s11, %s990_s25 }
  0x74   : > { %768 = vmatpush3.bf16.msra.mxu0 %v767_v7  ;;  %v779_v33 = vpack.c.bf16 %v323_v29, %v322_v28  ;;  %v324_v34 = vld [vmem:[#allocation5 + $0x60] sm:$0xff]  ;;  %v325_v35 = vld [vmem:[#allocation5 + $0x68] sm:$0xff]  ;;  %v800_v36 = vpack.c.bf16 %v415_v32, %v414_v31  ;;  %v416_v37 = vld [vmem:[#allocation7 + $0x50] sm:$0xff]  ;;  %p988_p10 = pneg %p987_p1 }
  0x75   : > { %769 = vmatprep.subr.bf16.mxu0 %v1078_v0  ;;  %v417_v38 = vld [vmem:[#allocation7 + $0x58] sm:$0xff]  ;;  %v782_v39 = vpack.c.bf16 %v325_v35, %v324_v34  ;;  %v326_v40 = vld [vmem:[#allocation5 + $0x70] sm:$0xff]  ;;  %v418_v43 = vld [vmem:[#allocation7 + $0x60] sm:$0xff] }
  0x76   : > { %792 = vmatpush3.bf16.msra.mxu1 %v791_v18  ;;  %v327_v41 = vld [vmem:[#allocation5 + $0x78] sm:$0xff]  ;;  %v803_v42 = vpack.c.bf16 %v417_v38, %v416_v37  ;;  %v419_v44 = vld [vmem:[#allocation7 + $0x68] sm:$0xff]  ;;  %v420_v48 = vld [vmem:[#allocation7 + $0x70] sm:$0xff] }
  0x77   : > { %793 = vmatprep.subr.bf16.mxu1 %v1078_v0  ;;  %v785_v45 = vpack.c.bf16 %v327_v41, %v326_v40  ;;  %v806_v46 = vpack.c.bf16 %v419_v44, %v418_v43  ;;  %v311_v47 = vld [vmem:[%s1303_s17] sm:$0xff]  ;;  %s991_s17 = scalar_lea.vmem %s990_s25, 256 }
  0x78   : > { %771 = vmatpush3.bf16.msra.mxu0 %v770_v14  ;;  %v421_v49 = vld [vmem:[#allocation7 + $0x78] sm:$0xff]  ;;  %v653_v51 = vld [vmem:[%s1393_s2] ss:$0 sm:$0xff]  ;;  %p993_p5 = scmp.lt.s32.totalorder %s991_s17, %s985_s16 }
  0x79   : > { %772 = vmatprep.subr.bf16.mxu0 %v1078_v0  ;;  %v809_v50 = vpack.c.bf16 %v421_v49, %v420_v48  ;;  %v654_v56 = vld [vmem:[%s1395_s4] ss:$0 sm:$0xff] }
  0x7a   : > { %795 = vmatpush3.bf16.msra.mxu1 %v794_v24  ;;  %p994_p9 = por %p993_p5, %p992_p3 }
  0x7b   : > { %796 = vmatprep.subr.bf16.mxu1 %v1078_v0 }
  0x7c   : > { %774 = vmatpush3.bf16.msra.mxu0 %v773_v21  ;;  %p995_p11 = pnand %p994_p9, %p988_p10 }
  0x7d   : > { %775 = vmatprep.subr.bf16.mxu0 %v1078_v0 }
  0x7e   : > { %798 = vmatpush3.bf16.msra.mxu1 %v797_v30 }
  0x7f   : > { %799 = vmatprep.subr.bf16.mxu1 %v1078_v0 }
  0x80   : > { %777 = vmatpush3.bf16.msra.mxu0 %v776_v27 }
  0x81   : > { %778 = vmatprep.subr.bf16.mxu0 %v1078_v0 }
  0x82   : > { %801 = vmatpush3.bf16.msra.mxu1 %v800_v36 }
  0x83   : > { %802 = vmatprep.subr.bf16.mxu1 %v1078_v0 }
  0x84   : > { %780 = vmatpush3.bf16.msra.mxu0 %v779_v33 }
  0x85   : > { %781 = vmatprep.subr.bf16.mxu0 %v1078_v0 }
  0x86   : > { %804 = vmatpush3.bf16.msra.mxu1 %v803_v42 }
  0x87   : > { %805 = vmatprep.subr.bf16.mxu1 %v1078_v0 }
  0x88   : > { %783 = vmatpush3.bf16.msra.mxu0 %v782_v39 }
  0x89   : > { %784 = vmatprep.subr.bf16.mxu0 %v1078_v0 }
  0x8a   : > { %807 = vmatpush3.bf16.msra.mxu1 %v806_v46 }
  0x8b   : > { %808 = vmatprep.subr.bf16.mxu1 %v1078_v0 }
  0x8c   : > { %786 = vmatpush3.bf16.msra.mxu0 %v785_v45 }
  0x8e   : > { %810 = vmatpush3.bf16.msra.mxu1 %v809_v50 }
  0x8f   : > { %726 = vmatmul.mubr.f32.vlgmr.msra.gmra.mrb[0].mxu0 %v311_v47 }
 0x162   : > { %v401_v52 = vpop.f32.mrb[0].mxu0 }
 0x163   : > { %v402_v53 = vadd.f32 %v653_v51, %v401_v52  ;;  %v727_v54 = vpop.f32.mrb[1].mxu0 }
 0x165   : > { %v405_v55 = vmax.f32 %v402_v53, 0.0 }
 0x167   : > { %761 = vmatmul.mubr.f32.vlgmr.msra.gmra.mrb[0].mxu1 %v405_v55 }
 0x23a   : > { %v488_v57 = vpop.f32.mrb[0].mxu1 }
 0x23b   : > { %v503_v58 = vadd.f32 %v654_v56, %v488_v57  ;;  %v762_v59 = vpop.f32.mrb[1].mxu1 }
 0x23d   : > { %504 = vst [vmem:[%s306_s9] sm:$0xff] %v503_v58 }
 0x23e   : > { %998 = shalt.err (!%p995_p11)
}
 0x23f   : > { %s999_s13 = scalar_lea.hbm %s1342_s14, 128  ;;  %s1003_s30 = scalar_lea.hbm %s1396_s5, 256 }
 0x240   : > { %p1000_p0 = scmp.ne.s32.totalorder %s1342_s14, %s999_s13  ;;  %p1004_p6 = scmp.lt.u32.totalorder %s1342_s14, %s1396_s5 }
 0x241   : > { %p1005_p7 = scmp.lt.u32.totalorder %s1003_s30, %s999_s13  ;;  %p1007_p8 = scmp.lt.u32.totalorder %s999_s13, %s1342_s14 }
 0x242   : > { %p1001_p4 = pnand %p1000_p0, %p1411_p12 }
 0x243   : > { %p1006_p2 = por %p1005_p7, %p1004_p6 }
 0x244   : > { %p1002_p13 = pneg %p1001_p4 }
 0x245   : > { %p1008_p1 = por %p1007_p8, %p1006_p2 }
 0x247   : > { %p1009_p10 = pnand %p1008_p1, %p1002_p13 }
 0x249   : > { %1012 = shalt.err (!%p1009_p10)
}
 0x24a   : > { %821 = dma.vmem_to_hbm [thread:$0]  (%p1411_p12), %s1344_s11, 128, %s1342_s14, %s513_s10  }
 0x24b PF: > { %s538_s9 = sand.u32 1, %s1051_s18   ;;  %p1412_p3 = scmp.ne.s32.totalorder %s1404_s29, 0 }
 0x24c   : > { %p1413_p5 = scmp.ge.s32.totalorder %s1071_s23, 2  ;;  %s539_s15 = scalar_lea.sflag [#allocation4], %s538_s9 }
 0x24e   : > { %p835_p9 = pnand %p1413_p5, %p1412_p3 }
 0x250   : > { %1046 = dma.done.wait (!%p835_p9), %s539_s15, 128  }
 0x251   : > { %1048 = vsyncadd (!%p835_p9), %s539_s15, 4294967168  ;;  %s22_s23 = sadd.s32 1, %s1071_s23   ;;  %s1414_s18 = smov %s1055_s19 }
 0x252   : > { %p19_p11 = scmp.ge.s32.totalorder %s22_s23, 4   ;;  %s1415_s19 = smov %s1059_s20 }
 0x253   : > { %s1416_s20 = smov %s1254_s6  ;;  %s1417_s21 = smov %s1067_s22 }
 0x254   : > { %s1418_s22 = smov %s1420_s12  ;;  %21 = sbr.rel (!%p19_p11) target bundleno = 7 (0x7), region = 106 }
 0x25b   :  { %544 = vsyncpa [#allocation3], 1 }
 0x25c   :  { %546 = vsyncpa [#allocation3 + $0x1], 1 }
 0x25d   :  { %547 = vsyncpa [#allocation6], 1 }
 0x25e   :  { %548 = vsyncpa [#allocation4], 1 }
 0x25f   :  { %550 = vsyncpa [#allocation4 + $0x1], 1 }

</bundles_post_ra>
